<compile_context>
chip_gen: v7x
topology: tpu7x:2x2x1
jax: 0.10.0
libtpu: 0.0.40
codegen_flags: <defaults>
</compile_context>

<pallas_src>
import jax
import jax.numpy as jnp
from jax import lax
from jax.experimental import pallas as pl
from jax.experimental.pallas import tpu as pltpu

_LANE = 128
_NT_DIMS = (((1,), (1,)), ((), ()))   # A @ B.T  (contract last dim with last dim)
_NN_DIMS = (((1,), (0,)), ((), ()))   # A @ B    (contract last dim with first dim)


def _round_up(a, b):
    return (a + b - 1) // b * b


def _cdiv(a, b):
    return (a + b - 1) // b


def _make_kernel(mxu_dtype):
    def kernel(x_ref, w1_ref, w2t_ref, bf_ref, o_ref, acc_ref):
        # x_ref:   [tile_m, Hp]   (block constant across the k axis)
        # w1_ref:  [tile_k, Hp]   contiguous slice of padded w1  ([2H, H])
        # w2t_ref: [tile_k, Hp]   contiguous slice of padded w2.T ([2H, H])
        # bf_ref:  [1, Hp]        fused bias  (w2 @ b1 + b2)
        # acc_ref: [tile_m, Hp]   f32 accumulator over the 2H reduction axis
        k = pl.program_id(1)

        @pl.when(k == 0)
        def _():
            acc_ref[...] = jnp.zeros_like(acc_ref)

        # h_k = x @ w1_k^T  -> [tile_m, tile_k]  (b1 already folded into bf)
        h = lax.dot_general(x_ref[...], w1_ref[...], _NT_DIMS,
                            preferred_element_type=jnp.float32)

        # acc += h_k @ w2t_k  -> [tile_m, Hp]   (w2 pre-transposed, NN feed)
        acc_ref[...] += lax.dot_general(h.astype(mxu_dtype), w2t_ref[...],
                                        _NN_DIMS,
                                        preferred_element_type=jnp.float32)

        @pl.when(k == pl.num_programs(1) - 1)
        def _():
            # fused bias added exactly once, at the final reduction step.
            o_ref[...] = (acc_ref[...] + bf_ref[...]).astype(o_ref.dtype)

    return kernel


def _vmem_budget_bytes():
    """~82% of physical per-core VMEM (headroom for compiler scratch/sems)."""
    try:
        cap = int(pltpu.get_tpu_info().vmem_capacity_bytes)
    except Exception:
        cap = 64 * 1024 * 1024
    return int(cap * 0.82)


def _vmem_need(tile_m, tile_k, hp, itm, itw):
    return (2 * tile_m * hp * itm        # x tiles (double-buffered)
            + 2 * tile_m * hp * itm      # out tiles
            + 2 * tile_k * hp * itw      # w1 slices
            + 2 * tile_k * hp * itw      # w2^T slices
            + 2 * hp * 4                 # fused bias
            + tile_m * hp * 4            # f32 accumulator scratch
            + tile_m * tile_k * 4        # h intermediate (f32)
            + tile_m * tile_k * itm)     # h cast fed to 2nd matmul


def dummy_experts_forward(x, w1, b1, w2, b2):
    """x: [..., H]; w1: [2H, H]; b1: [2H]; w2: [H, 2H]; b2: [H]."""
    H = x.shape[-1]
    H2 = w1.shape[0]
    lead = x.shape[:-1]

    xm = x.reshape(-1, H)
    M = xm.shape[0]

    itm = jnp.dtype(x.dtype).itemsize
    itw = jnp.dtype(w1.dtype).itemsize
    sub_mult = 16 if itm <= 2 else 8          # dtype-native sublane multiple

    Hp = _round_up(H, _LANE)
    H2p = _round_up(H2, _LANE)

    budget = _vmem_budget_bytes()
    try:
        kind = jax.devices()[0].device_kind.lower()
    except Exception:
        kind = ""
    # v5e is already compute-bound at modest row tiles; don't chase 1024 there.
    big_vmem = (budget >= 96 * 1024 * 1024) and ("v5" not in kind)

    if itm <= 2:                               # bf16-like inputs
        tile_m_target = 1024 if big_vmem else 512
    else:                                      # f32 inputs
        tile_m_target = 512 if big_vmem else 256

    # Ensure >= 2 row blocks when M allows (v7x shards the parallel axis over
    # 2 TensorCores); no-op cost on single-TC chips.
    tile_m = min(tile_m_target, _round_up(max(_cdiv(M, 2), 1), sub_mult))
    tile_m = max(tile_m, sub_mult)

    def fits(tm, tk):
        return _vmem_need(tm, tk, Hp, itm, itw) <= budget

    # tile_k: largest divisor of H2p that fits the VMEM budget. tile_k == H2p
    # means weights are DMA'd once and stay VMEM-resident across all row tiles.
    tile_k = None
    for cand in (H2p,) + tuple(c for c in (4096, 2048, 1024, 512, 256, 128)
                               if c < H2p):
        if H2p % cand == 0 and fits(tile_m, cand):
            tile_k = cand
            break
    if tile_k is None:
        tile_k = 128                           # H2p is always a multiple of 128
        while tile_m > sub_mult and not fits(tile_m, tile_k):
            tile_m = max(sub_mult, _round_up(tile_m // 2, sub_mult))

    Mp = _round_up(M, tile_m)
    nm = Mp // tile_m
    nk = H2p // tile_k

    xp = jnp.pad(xm, ((0, Mp - M), (0, Hp - H)))
    w1p = jnp.pad(w1, ((0, H2p - H2), (0, Hp - H)))            # [H2p, Hp]
    w2tp = jnp.pad(w2.T, ((0, H2p - H2), (0, Hp - H)))         # [H2p, Hp]
    # Exact bias fold (no nonlinearity between the two linears): b = w2@b1 + b2
    b_fused = (jnp.dot(w2.astype(jnp.float32), b1.astype(jnp.float32))
               + b2.astype(jnp.float32))
    bfp = jnp.pad(b_fused, (0, Hp - H)).reshape(1, Hp)

    # Feed the MXU in the input dtype when it is bf16 (f32 accumulation kept).
    mxu_dtype = jnp.bfloat16 if x.dtype == jnp.dtype(jnp.bfloat16) else jnp.float32

    cost = pl.CostEstimate(
        flops=4 * Mp * H2p * Hp,
        transcendentals=0,
        bytes_accessed=(xp.size * itm + Mp * Hp * itm
                        + nm * (w1p.size * itw + w2tp.size * itw)
                        + bfp.size * 4),
    )

    grid_spec = pltpu.PrefetchScalarGridSpec(
        num_scalar_prefetch=0,
        grid=(nm, nk),
        in_specs=[
            pl.BlockSpec((tile_m, Hp), lambda i, k: (i, 0)),   # x (const over k)
            pl.BlockSpec((tile_k, Hp), lambda i, k: (k, 0)),   # w1 slice (contig)
            pl.BlockSpec((tile_k, Hp), lambda i, k: (k, 0)),   # w2^T slice (contig)
            pl.BlockSpec((1, Hp), lambda i, k: (0, 0)),        # fused bias
        ],
        out_specs=pl.BlockSpec((tile_m, Hp), lambda i, k: (i, 0)),
        scratch_shapes=[pltpu.VMEM((tile_m, Hp), jnp.float32)],
    )

    out = pl.pallas_call(
        _make_kernel(mxu_dtype),
        out_shape=jax.ShapeDtypeStruct((Mp, Hp), x.dtype),
        grid_spec=grid_spec,
        compiler_params=pltpu.CompilerParams(
            dimension_semantics=("parallel", "arbitrary"),
            vmem_limit_bytes=int(budget),
        ),
        cost_estimate=cost,
    )(xp, w1p, w2tp, bfp)

    return out[:M, :H].reshape(*lead, H)


def init_params(key, hidden_size, dtype=jnp.float32):
    """Deterministic init mirroring torch.nn.Linear shapes / default init.

    w1.weight: [2H, H], w1.bias: [2H]; w2.weight: [H, 2H], w2.bias: [H].
    """
    k1, k2, k3, k4 = jax.random.split(key, 4)
    H = hidden_size
    bound1 = 1.0 / (H ** 0.5)
    bound2 = 1.0 / ((2 * H) ** 0.5)
    w1 = jax.random.uniform(k1, (2 * H, H), dtype, -bound1, bound1)
    b1 = jax.random.uniform(k2, (2 * H,), dtype, -bound1, bound1)
    w2 = jax.random.uniform(k3, (H, 2 * H), dtype, -bound2, bound2)
    b2 = jax.random.uniform(k4, (H,), dtype, -bound2, bound2)
    return w1, b1, w2, b2


if __name__ == "__main__":
    key = jax.random.PRNGKey(0)
    kx, kp = jax.random.split(key)

    batch, seq, hidden = 2, 8, 32
    x = jax.random.normal(kx, (batch, seq, hidden), dtype=jnp.float32)
    w1, b1, w2, b2 = init_params(kp, hidden)

    fwd = jax.jit(dummy_experts_forward)
    y = fwd(x, w1, b1, w2, b2)
    y = jax.block_until_ready(y)

    # Reference (same math as the torch forward).
    y_ref = ((x.reshape(-1, hidden) @ w1.T + b1) @ w2.T + b2).reshape(
        batch, seq, hidden)
    assert y.shape == (batch, seq, hidden)
    assert jnp.allclose(y, y_ref, atol=1e-4, rtol=1e-4), float(
        jnp.max(jnp.abs(y - y_ref)))

    print("KERNEL_OK")
</pallas_src>

<mosaic_0001>
module attributes {stable_mosaic.version = 11 : i64} {
  func.func @kernel(%arg0: i32, %arg1: i32, %arg2: memref<8x128xf32, #tpu.memory_space<vmem>>, %arg3: memref<128x128xf32, #tpu.memory_space<vmem>>, %arg4: memref<128x128xf32, #tpu.memory_space<vmem>>, %arg5: memref<1x128xf32, #tpu.memory_space<vmem>>, %arg6: memref<8x128xf32, #tpu.memory_space<vmem>>, %arg7: memref<8x128xf32, #tpu.memory_space<vmem>>) attributes {dimension_semantics = [#tpu.dimension_semantics<parallel>, #tpu.dimension_semantics<arbitrary>], iteration_bounds = array<i64: 2, 1>, scalar_prefetch = 0 : i64, scratch_operands = 1 : i64, tpu.core_type = #tpu.core_type<tc>, window_params = [{transform_indices = @transform_0, window_bounds = array<i64: 8, 128>}, {transform_indices = @transform_1, window_bounds = array<i64: 128, 128>}, {transform_indices = @transform_2, window_bounds = array<i64: 128, 128>}, {pipeline_mode = #tpu.pipeline_mode<synchronous>, transform_indices = @transform_3, window_bounds = array<i64: 1, 128>}, {transform_indices = @transform_4, window_bounds = array<i64: 8, 128>}]} {
    %c0_i32 = arith.constant 0 : i32
    %0 = arith.cmpi eq, %arg1, %c0_i32 : i32
    %1 = arith.extui %0 : i1 to i32
    %c0_i32_0 = arith.constant 0 : i32
    %2 = arith.cmpi ne, %1, %c0_i32_0 : i32
    scf.if %2 {
      %cst_13 = arith.constant 0.000000e+00 : f32
      %14 = vector.broadcast %cst_13 : f32 to vector<8x128xf32>
      %c0_14 = arith.constant 0 : index
      %c0_15 = arith.constant 0 : index
      %15 = vector.load %arg7[%c0_14, %c0_15] : memref<8x128xf32, #tpu.memory_space<vmem>>, vector<8x128xf32>
      tpu.vector_store %arg7[%c0_14, %c0_15], %14 {strides = array<i32>} : memref<8x128xf32, #tpu.memory_space<vmem>>, vector<8x128xf32>,
    } else {
    }
    %c0 = arith.constant 0 : index
    %c0_1 = arith.constant 0 : index
    %3 = vector.load %arg2[%c0, %c0_1] : memref<8x128xf32, #tpu.memory_space<vmem>>, vector<8x128xf32>
    %c0_2 = arith.constant 0 : index
    %c0_3 = arith.constant 0 : index
    %4 = vector.load %arg3[%c0_2, %c0_3] : memref<128x128xf32, #tpu.memory_space<vmem>>, vector<128x128xf32>
    %cst = arith.constant dense<0.000000e+00> : vector<8x128xf32>
    %5 = tpu.matmul %3, %4, %cst {dimension_numbers = #tpu.dot_dimension_numbers<[1], [1], [0], [0], [0, 0, 1, 0], [], []>} : vector<8x128xf32>, vector<128x128xf32>, vector<8x128xf32> -> vector<8x128xf32>
    %c0_4 = arith.constant 0 : index
    %c0_5 = arith.constant 0 : index
    %6 = vector.load %arg7[%c0_4, %c0_5] : memref<8x128xf32, #tpu.memory_space<vmem>>, vector<8x128xf32>
    %c0_6 = arith.constant 0 : index
    %c0_7 = arith.constant 0 : index
    %7 = vector.load %arg4[%c0_6, %c0_7] : memref<128x128xf32, #tpu.memory_space<vmem>>, vector<128x128xf32>
    %cst_8 = arith.constant dense<0.000000e+00> : vector<8x128xf32>
    %8 = tpu.matmul %5, %7, %cst_8 {dimension_numbers = #tpu.dot_dimension_numbers<[1], [0], [0], [1], [0, 0, 1, 1], [], []>} : vector<8x128xf32>, vector<128x128xf32>, vector<8x128xf32> -> vector<8x128xf32>
    %9 = arith.addf %6, %8 : vector<8x128xf32>
    %c0_9 = arith.constant 0 : index
    %c0_10 = arith.constant 0 : index
    %10 = vector.load %arg7[%c0_9, %c0_10] : memref<8x128xf32, #tpu.memory_space<vmem>>, vector<8x128xf32>
    tpu.vector_store %arg7[%c0_9, %c0_10], %9 {strides = array<i32>} : memref<8x128xf32, #tpu.memory_space<vmem>>, vector<8x128xf32>,
    %c0_i32_11 = arith.constant 0 : i32
    %11 = arith.cmpi eq, %arg1, %c0_i32_11 : i32
    %12 = arith.extui %11 : i1 to i32
    %c0_i32_12 = arith.constant 0 : i32
    %13 = arith.cmpi ne, %12, %c0_i32_12 : i32
    scf.if %13 {
      %c0_13 = arith.constant 0 : index
      %c0_14 = arith.constant 0 : index
      %14 = vector.load %arg7[%c0_13, %c0_14] : memref<8x128xf32, #tpu.memory_space<vmem>>, vector<8x128xf32>
      %c0_15 = arith.constant 0 : index
      %c0_16 = arith.constant 0 : index
      %15 = vector.load %arg5[%c0_15, %c0_16] : memref<1x128xf32, #tpu.memory_space<vmem>>, vector<1x128xf32>
      %16 = vector.broadcast %15 : vector<1x128xf32> to vector<8x128xf32>
      %17 = arith.addf %14, %16 : vector<8x128xf32>
      %c0_17 = arith.constant 0 : index
      %c0_18 = arith.constant 0 : index
      %18 = vector.load %arg6[%c0_17, %c0_18] : memref<8x128xf32, #tpu.memory_space<vmem>>, vector<8x128xf32>
      tpu.vector_store %arg6[%c0_17, %c0_18], %17 {strides = array<i32>} : memref<8x128xf32, #tpu.memory_space<vmem>>, vector<8x128xf32>,
    } else {
    }
    return
  }
  func.func @transform_0(%arg0: i32, %arg1: i32) -> (i32, i32) {
    %c0_i32 = arith.constant 0 : i32
    %c0_i32_0 = arith.constant 0 : i32
    return %arg0, %c0_i32 : i32, i32
  }
  func.func @transform_1(%arg0: i32, %arg1: i32) -> (i32, i32) {
    %c0_i32 = arith.constant 0 : i32
    %c0_i32_0 = arith.constant 0 : i32
    return %arg1, %c0_i32 : i32, i32
  }
  func.func @transform_2(%arg0: i32, %arg1: i32) -> (i32, i32) {
    %c0_i32 = arith.constant 0 : i32
    %c0_i32_0 = arith.constant 0 : i32
    return %arg1, %c0_i32 : i32, i32
  }
  func.func @transform_3(%arg0: i32, %arg1: i32) -> (i32, i32) {
    %c0_i32 = arith.constant 0 : i32
    %c0_i32_0 = arith.constant 0 : i32
    %c0_i32_1 = arith.constant 0 : i32
    return %c0_i32, %c0_i32_0 : i32, i32
  }
  func.func @transform_4(%arg0: i32, %arg1: i32) -> (i32, i32) {
    %c0_i32 = arith.constant 0 : i32
    %c0_i32_0 = arith.constant 0 : i32
    return %arg0, %c0_i32 : i32, i32
  }
}

</mosaic_0001>

<bundles_post_ra>
// kernel: dummy_experts_forward.1
= control target key start
LH: loop header
LB: loop body
LE: loop exit
PB: predicated region body
PF: predicated region fallthrough
CT: control target
= control target key end

     0   :  { %s778_s15 = smov 0   ;;  %s780_s16 = smov 0   ;;  %s930_s0 = inlined_call_operand.vmem [shape: f32[16,128], index: 0, kind: input, shape index: {}]   ;;  %s931_s1 = inlined_call_operand.vmem [shape: f32[128,128], index: 1, kind: input, shape index: {}]   ;;  %s932_s2 = inlined_call_operand.vmem [shape: f32[128,128], index: 2, kind: input, shape index: {}]   ;;  %s933_s3 = inlined_call_operand.vmem [shape: f32[1,128], index: 3, kind: input, shape index: {}]   ;;  %s934_s4 = inlined_call_operand.vmem [shape: f32[16,128], index: 4, kind: output, shape index: {}]  }
   0x1   :  { %s782_s17 = smov 0  }
   0x2 LB: > { %s26_s18 = sadd.s32 1, %s744_s16  ;;  %p541_p0 = scmp.ge.s32.totalorder %s748_s17, 1  ;;  %s748_s17 = sphi %s782_s17, %s14_s17   ;;  %s744_s16 = sphi %s780_s16, %s936_s16   ;;  %s740_s15 = sphi %s778_s15, %s935_s15  }
   0x3   : > { %p28_p1 = scmp.ge.s32.totalorder %s26_s18, 2  ;;  %p195_p2 = scmp.lt.s32.totalorder %s748_s17, 3 }
   0x5   : > { %s938_s18 = smov (%p28_p1, %s26_s18), 0  ;;  %p196_p3 = pnand %p541_p0, %p195_p2 }
   0x6   : > { %v255_v0 = vld [vmem:[%s931_s1] sm:$0xff] (!%p196_p3)  ;;  %v256_v1 = vld [vmem:[%s931_s1 + $0x8] sm:$0xff] (!%p196_p3)  ;;  %v750_v2 = vmov (!%p196_p3), 0.0|0.0   ;;  %vm751_vm0 = vmmov (!%p196_p3), 0   ;;  %v752_v4 = vmov (!%p196_p3), 0.0   ;;  %v257_v5 = vld [vmem:[%s931_s1 + $0x10] sm:$0xff] (!%p196_p3) }
   0x7   : > { %199 = sbr.rel (%p196_p3) target bundleno = 499 (0x1f3), region = 36  ;;  %651 = vmatprep.subr.bf16.mxu0 (!%p196_p3), %v750_v2  ;;  %v652_v3 = vpack.c.bf16 (!%p196_p3), %v256_v1, %v255_v0  ;;  %613 = vmatprep.mubr.msk.f32.mxu0 (!%p196_p3), %vm751_vm0, %v752_v4  ;;  %v258_v6 = vld [vmem:[%s931_s1 + $0x18] sm:$0xff] (!%p196_p3)  ;;  %v342_v7 = vld [vmem:[%s932_s2] sm:$0xff] (!%p196_p3)  ;;  %v343_v8 = vld [vmem:[%s932_s2 + $0x8] sm:$0xff] (!%p196_p3)  ;;  %p229_p4 = scmp.lt.s32.totalorder (!%p196_p3), %s740_s15, 1 }
   0x8   : > { %675 = vmatprep.subr.bf16.mxu1 (!%p196_p3), %v750_v2  ;;  %648 = vmatprep.mubr.msk.f32.mxu1 (!%p196_p3), %vm751_vm0, %v752_v4  ;;  %v676_v9 = vpack.c.bf16 (!%p196_p3), %v343_v8, %v342_v7  ;;  %v344_v10 = vld [vmem:[%s932_s2 + $0x10] sm:$0xff] (!%p196_p3)  ;;  %v345_v11 = vld [vmem:[%s932_s2 + $0x18] sm:$0xff] (!%p196_p3)  ;;  %v655_v12 = vpack.c.bf16 (!%p196_p3), %v258_v6, %v257_v5  ;;  %v346_v14 = vld [vmem:[%s932_s2 + $0x20] sm:$0xff] (!%p196_p3) }
   0x9   : > { %653 = vmatpush3.bf16.xpose.msra.mxu0 (!%p196_p3), %v652_v3  ;;  %v679_v13 = vpack.c.bf16 (!%p196_p3), %v345_v11, %v344_v10  ;;  %v347_v15 = vld [vmem:[%s932_s2 + $0x28] sm:$0xff] (!%p196_p3)  ;;  %v259_v16 = vld [vmem:[%s931_s1 + $0x20] sm:$0xff] (!%p196_p3)  ;;  %v348_v19 = vld [vmem:[%s932_s2 + $0x30] sm:$0xff] (!%p196_p3) }
   0xa   : > { %654 = vmatprep.subr.bf16.mxu0 (!%p196_p3), %v750_v2  ;;  %677 = vmatpush3.bf16.msra.mxu1 (!%p196_p3), %v676_v9  ;;  %v260_v17 = vld [vmem:[%s931_s1 + $0x28] sm:$0xff] (!%p196_p3)  ;;  %v682_v18 = vpack.c.bf16 (!%p196_p3), %v347_v15, %v346_v14  ;;  %v349_v20 = vld [vmem:[%s932_s2 + $0x38] sm:$0xff] (!%p196_p3)  ;;  %v350_v23 = vld [vmem:[%s932_s2 + $0x40] sm:$0xff] (!%p196_p3) }
   0xb   : > { %678 = vmatprep.subr.bf16.mxu1 (!%p196_p3), %v750_v2  ;;  %v658_v21 = vpack.c.bf16 (!%p196_p3), %v260_v17, %v259_v16  ;;  %v685_v22 = vpack.c.bf16 (!%p196_p3), %v349_v20, %v348_v19  ;;  %v351_v24 = vld [vmem:[%s932_s2 + $0x48] sm:$0xff] (!%p196_p3)  ;;  %v261_v25 = vld [vmem:[%s931_s1 + $0x30] sm:$0xff] (!%p196_p3)  ;;  %v262_v26 = vld [vmem:[%s931_s1 + $0x38] sm:$0xff] (!%p196_p3) }
   0xc   : > { %v688_v27 = vpack.c.bf16 (!%p196_p3), %v351_v24, %v350_v23  ;;  %v352_v28 = vld [vmem:[%s932_s2 + $0x50] sm:$0xff] (!%p196_p3)  ;;  %v353_v29 = vld [vmem:[%s932_s2 + $0x58] sm:$0xff] (!%p196_p3)  ;;  %v661_v30 = vpack.c.bf16 (!%p196_p3), %v262_v26, %v261_v25  ;;  %v354_v32 = vld [vmem:[%s932_s2 + $0x60] sm:$0xff] (!%p196_p3) }
   0xd   : > { %v691_v31 = vpack.c.bf16 (!%p196_p3), %v353_v29, %v352_v28  ;;  %v355_v33 = vld [vmem:[%s932_s2 + $0x68] sm:$0xff] (!%p196_p3)  ;;  %v263_v34 = vld [vmem:[%s931_s1 + $0x40] sm:$0xff] (!%p196_p3)  ;;  %v356_v37 = vld [vmem:[%s932_s2 + $0x70] sm:$0xff] (!%p196_p3) }
   0xe   : > { %680 = vmatpush3.bf16.msra.mxu1 %v679_v13  ;;  %v264_v35 = vld [vmem:[%s931_s1 + $0x48] sm:$0xff]  ;;  %v694_v36 = vpack.c.bf16 %v355_v33, %v354_v32  ;;  %v357_v38 = vld [vmem:[%s932_s2 + $0x78] sm:$0xff]  ;;  %v265_v41 = vld [vmem:[%s931_s1 + $0x50] sm:$0xff]  ;;  %s940_s15 = smov (!%p229_p4, %s740_s15), 1 }
   0xf   : > { %681 = vmatprep.subr.bf16.mxu1 %v750_v2  ;;  %v664_v39 = vpack.c.bf16 %v264_v35, %v263_v34  ;;  %v697_v40 = vpack.c.bf16 %v357_v38, %v356_v37  ;;  %v266_v42 = vld [vmem:[%s931_s1 + $0x58] sm:$0xff]  ;;  %v267_v44 = vld [vmem:[%s931_s1 + $0x60] sm:$0xff]  ;;  %v268_v45 = vld [vmem:[%s931_s1 + $0x68] sm:$0xff]  ;;  %s542_s13 = sshll.u32 %s940_s15, 3 }
  0x10   : > { %v667_v43 = vpack.c.bf16 %v266_v42, %v265_v41  ;;  %v670_v46 = vpack.c.bf16 %v268_v45, %v267_v44  ;;  %v269_v47 = vld [vmem:[%s931_s1 + $0x70] sm:$0xff]  ;;  %v270_v48 = vld [vmem:[%s931_s1 + $0x78] sm:$0xff]  ;;  %s232_s20 = scalar_lea.vmem %s930_s0, %s542_s13  ;;  %v544_v53 = vld [vmem:[%s933_s3] ss:$0 sm:$0xff]  ;;  %s248_s25 = scalar_lea.vmem %s934_s4, %s542_s13 }
  0x11   : > { %656 = vmatpush3.bf16.xpose.msra.mxu0 %v655_v12  ;;  %v673_v49 = vpack.c.bf16 %v270_v48, %v269_v47  ;;  %v254_v50 = vld [vmem:[%s232_s20] sm:$0xff] }
  0x12   : > { %657 = vmatprep.subr.bf16.mxu0 %v750_v2  ;;  %683 = vmatpush3.bf16.msra.mxu1 %v682_v18 }
  0x13   : > { %684 = vmatprep.subr.bf16.mxu1 %v750_v2 }
  0x16   : > { %686 = vmatpush3.bf16.msra.mxu1 %v685_v22 }
  0x17   : > { %687 = vmatprep.subr.bf16.mxu1 %v750_v2 }
  0x19   : > { %659 = vmatpush3.bf16.xpose.msra.mxu0 %v658_v21 }
  0x1a   : > { %660 = vmatprep.subr.bf16.mxu0 %v750_v2  ;;  %689 = vmatpush3.bf16.msra.mxu1 %v688_v27 }
  0x1b   : > { %690 = vmatprep.subr.bf16.mxu1 %v750_v2 }
  0x1e   : > { %692 = vmatpush3.bf16.msra.mxu1 %v691_v31 }
  0x1f   : > { %693 = vmatprep.subr.bf16.mxu1 %v750_v2 }
  0x21   : > { %662 = vmatpush3.bf16.xpose.msra.mxu0 %v661_v30 }
  0x22   : > { %663 = vmatprep.subr.bf16.mxu0 %v750_v2  ;;  %695 = vmatpush3.bf16.msra.mxu1 %v694_v36 }
  0x23   : > { %696 = vmatprep.subr.bf16.mxu1 %v750_v2 }
  0x26   : > { %698 = vmatpush3.bf16.msra.mxu1 %v697_v40 }
  0x29   : > { %665 = vmatpush3.bf16.xpose.msra.mxu0 %v664_v39 }
  0x2a   : > { %666 = vmatprep.subr.bf16.mxu0 %v750_v2 }
  0x31   : > { %668 = vmatpush3.bf16.xpose.msra.mxu0 %v667_v43 }
  0x32   : > { %669 = vmatprep.subr.bf16.mxu0 %v750_v2 }
  0x39   : > { %671 = vmatpush3.bf16.xpose.msra.mxu0 %v670_v46 }
  0x3a   : > { %672 = vmatprep.subr.bf16.mxu0 %v750_v2 }
  0x41   : > { %674 = vmatpush3.bf16.xpose.msra.mxu0 %v673_v49 }
  0x48   : > { %614 = vmatmul.mubr.f32.vlgmr.msra.gmra.mrb[0].mxu0 %v254_v50 }
 0x11b   : > { %v337_v51 = vpop.f32.mrb[0].mxu0 }
 0x11c   : > { %v615_v52 = vpop.f32.mrb[1].mxu0  ;;  %649 = vmatmul.mubr.f32.vlgmr.msra.gmra.mrb[0].mxu1 %v337_v51 }
 0x1ef   : > { %v424_v54 = vpop.f32.mrb[0].mxu1 }
 0x1f0   : > { %v441_v55 = vadd.f32 %v544_v53, %v424_v54  ;;  %v650_v56 = vpop.f32.mrb[1].mxu1 }
 0x1f2   : > { %442 = vst [vmem:[%s248_s25] sm:$0xff] %v441_v55 }
 0x1f3 PF: > { %s14_s17 = sadd.s32 1, %s748_s17   ;;  %s935_s15 = smov %s744_s16 }
 0x1f4   : > { %p11_p5 = scmp.ge.s32.totalorder %s14_s17, 4   ;;  %s936_s16 = smov %s938_s18 }
 0x1f6   :  { %13 = sbr.rel (!%p11_p5) target bundleno = 2 (0x2), region = 80 }

</bundles_post_ra>
